<compile_context>
chip_gen: v6e
topology: v6e:2x2x1
jax: 0.10.0
libtpu: 0.0.40
codegen_flags: <defaults>
</compile_context>

<pallas_src>
import functools
import math

import jax
import jax.numpy as jnp
from jax.experimental import pallas as pl
from jax.experimental.pallas import tpu as pltpu

LANE = 128
SUBLANE_BF16 = 16          # bf16 sublane pack factor
N_LAYERS = 4


def _round_up(x, m):
    return ((x + m - 1) // m) * m


def layer_dims(state_dim, action_dim, hidden_dim):
    return [(state_dim, hidden_dim),
            (hidden_dim, hidden_dim * 2),
            (hidden_dim * 2, hidden_dim),
            (hidden_dim, action_dim)]


def actor_kernel(x_ref, w_ref, b_ref, o_ref, *, sd_pad):
    """x_ref: (TB, sd_pad) bf16 -- true state features (padded to 16, not 128)
       w_ref: (4*PAD, PAD) bf16 -- four weight blocks stacked along rows
       b_ref: (8, PAD)     f32  -- one bias row per layer (sublane-friendly 8 rows)
       o_ref: (TB, PAD)    bf16 -- lane-dense output tile (only action_dim lanes real)
    Computes relu(relu(relu(xW1+b1)W2+b2)W3+b3)W4+b4 for one batch tile."""
    pad = w_ref.shape[1]
    h = x_ref[...]                                        # bf16 (TB, sd_pad)
    for layer in range(N_LAYERS):                         # static 4-layer unroll
        k = sd_pad if layer == 0 else pad                 # layer 0: contract only real state rows
        w = w_ref[layer * pad:layer * pad + k, :]         # bf16 (k, PAD), static aligned slice
        b = b_ref[layer:layer + 1, :]                     # f32 (1, PAD)
        y = jnp.dot(h, w, preferred_element_type=jnp.float32) + b
        if layer < N_LAYERS - 1:
            h = jnp.maximum(y, 0.0).astype(jnp.bfloat16)  # relu in f32, bf16 for next MXU pass
        else:
            h = y.astype(jnp.bfloat16)                    # bf16 writeback (halves output HBM stream)
    o_ref[...] = h


def pack_actor_params(params, state_dim, action_dim, hidden_dim):
    """Pack 4 (W, b) pairs into one zero-padded bf16 weight slab + one f32 bias slab.
    Call ONCE per parameter set (hoisted off the forward hot path)."""
    dims = layer_dims(state_dim, action_dim, hidden_dim)
    pad = _round_up(max(max(d) for d in dims), LANE)
    sd_pad = _round_up(state_dim, SUBLANE_BF16)
    w_slab = jnp.zeros((N_LAYERS * pad, pad), jnp.bfloat16)
    b_slab = jnp.zeros((8, pad), jnp.float32)
    for i, (fi, fo) in enumerate(dims):
        w = params[f"w{i + 1}"].astype(jnp.bfloat16)      # [fi, fo]
        b = params[f"b{i + 1}"].astype(jnp.float32)       # [1, fo]
        w_slab = w_slab.at[i * pad:i * pad + fi, :fo].set(w)
        b_slab = b_slab.at[i, :fo].set(b.reshape(-1))
    return w_slab, b_slab, pad, sd_pad


def _pick_batch_tile(batch):
    """Multiple of 16 (bf16 sublane pack), capped at 1024; >= 2 grid steps for
    large batches so the 'parallel' axis can shard across v7x's two TCs."""
    if batch <= SUBLANE_BF16:
        return SUBLANE_BF16
    return min(1024, _round_up((batch + 1) // 2, SUBLANE_BF16))


def _actor_forward(x, w_slab, b_slab, *, state_dim, action_dim, pad, sd_pad):
    batch = x.shape[0]
    tb = _pick_batch_tile(batch)
    padded_batch = _round_up(batch, tb)

    xb = x.astype(jnp.bfloat16)
    feat_pad = sd_pad - state_dim
    row_pad = padded_batch - batch
    if feat_pad or row_pad:
        xb = jnp.pad(xb, ((0, row_pad), (0, feat_pad)))   # batch/sublane pad only, no 128-lane pad

    out = pl.pallas_call(
        functools.partial(actor_kernel, sd_pad=sd_pad),
        out_shape=jax.ShapeDtypeStruct((padded_batch, pad), jnp.bfloat16),
        grid=(padded_batch // tb,),
        in_specs=[
            pl.BlockSpec((tb, sd_pad), lambda i: (i, 0)),            # narrow input stream per tile
            pl.BlockSpec((N_LAYERS * pad, pad), lambda i: (0, 0)),   # weights: DMA'd once, resident
            pl.BlockSpec((8, pad), lambda i: (0, 0)),                # biases: DMA'd once, resident
        ],
        out_specs=pl.BlockSpec((tb, pad), lambda i: (i, 0)),         # lane-dense bf16 writeback
        compiler_params=pltpu.CompilerParams(
            dimension_semantics=("parallel",)),
    )(xb, w_slab, b_slab)

    # Tiny final slice/cast (batch x action_dim) to match the PyTorch module's f32 output.
    return out[:batch, :action_dim].astype(jnp.float32)


def make_actor(params, state_dim, action_dim, hidden_dim):
    """Pack parameters once and return a jitted forward closure. The packed slabs
    are passed as jit arguments (not baked-in constants) and reused every call."""
    w_slab, b_slab, pad, sd_pad = pack_actor_params(params, state_dim, action_dim, hidden_dim)
    fwd = jax.jit(functools.partial(
        _actor_forward, state_dim=state_dim, action_dim=action_dim, pad=pad, sd_pad=sd_pad))
    return lambda x: fwd(x, w_slab, b_slab)


def init_actor_params(key, state_dim, action_dim, hidden_dim):
    """Deterministic init mimicking PyTorch nn.Linear (U[-1/sqrt(fan_in), +])."""
    params = {}
    for i, (fan_in, fan_out) in enumerate(layer_dims(state_dim, action_dim, hidden_dim), 1):
        key, kw, kb = jax.random.split(key, 3)
        bound = 1.0 / math.sqrt(fan_in)
        params[f"w{i}"] = jax.random.uniform(
            kw, (fan_in, fan_out), jnp.float32, minval=-bound, maxval=bound)
        params[f"b{i}"] = jax.random.uniform(
            kb, (1, fan_out), jnp.float32, minval=-bound, maxval=bound)
    return params


def actor_reference_bf16(x, params):
    """Mirrors the kernel's numerics: bf16 MXU operands, f32 accumulate/bias/relu,
    bf16 final store."""
    h = x.astype(jnp.bfloat16).astype(jnp.float32)
    for i in range(1, N_LAYERS + 1):
        w = params[f"w{i}"].astype(jnp.bfloat16).astype(jnp.float32)
        h = h @ w + params[f"b{i}"]
        if i < N_LAYERS:
            h = jnp.maximum(h, 0.0).astype(jnp.bfloat16).astype(jnp.float32)
        else:
            h = h.astype(jnp.bfloat16).astype(jnp.float32)
    return h


def actor_reference_f32(x, params):
    h = jnp.maximum(x @ params["w1"] + params["b1"], 0.0)
    h = jnp.maximum(h @ params["w2"] + params["b2"], 0.0)
    h = jnp.maximum(h @ params["w3"] + params["b3"], 0.0)
    return h @ params["w4"] + params["b4"]


if __name__ == "__main__":
    batch = 8
    state_dim = 16
    action_dim = 4
    hidden_dim = 32

    key = jax.random.PRNGKey(0)
    key, kx = jax.random.split(key)
    x = jax.random.normal(kx, (batch, state_dim), jnp.float32)
    params = init_actor_params(key, state_dim, action_dim, hidden_dim)

    actor = make_actor(params, state_dim, action_dim, hidden_dim)   # packs weights ONCE
    out = jax.block_until_ready(actor(x))
    assert out.shape == (batch, action_dim)

    # Exact-semantics check (same bf16 operand / output casts as the kernel).
    ref_bf16 = actor_reference_bf16(x, params)
    assert jnp.allclose(out, ref_bf16, atol=2e-2, rtol=2e-2), "mismatch vs bf16-mirror reference"

    # Loose sanity check against the full-f32 PyTorch-equivalent forward.
    ref_f32 = actor_reference_f32(x, params)
    assert jnp.allclose(out, ref_f32, atol=8e-2, rtol=8e-2), "mismatch vs f32 reference"

    print("KERNEL_OK")
</pallas_src>

<mosaic_0001>
module attributes {stable_mosaic.version = 11 : i64} {
  func.func @actor_kernel(%arg0: i32, %arg1: memref<16x16xbf16, #tpu.memory_space<vmem>>, %arg2: memref<512x128xbf16, #tpu.memory_space<vmem>>, %arg3: memref<8x128xf32, #tpu.memory_space<vmem>>, %arg4: memref<16x128xbf16, #tpu.memory_space<vmem>>) attributes {dimension_semantics = [#tpu.dimension_semantics<parallel>], iteration_bounds = array<i64: 1>, scalar_prefetch = 0 : i64, scratch_operands = 0 : i64, tpu.core_type = #tpu.core_type<tc>, window_params = [{transform_indices = @transform_0, window_bounds = array<i64: 16, 16>}, {pipeline_mode = #tpu.pipeline_mode<synchronous>, transform_indices = @transform_1, window_bounds = array<i64: 512, 128>}, {pipeline_mode = #tpu.pipeline_mode<synchronous>, transform_indices = @transform_2, window_bounds = array<i64: 8, 128>}, {transform_indices = @transform_3, window_bounds = array<i64: 16, 128>}]} {
    %c0 = arith.constant 0 : index
    %c0_0 = arith.constant 0 : index
    %0 = vector.load %arg1[%c0, %c0_0] : memref<16x16xbf16, #tpu.memory_space<vmem>>, vector<16x16xbf16>
    %c0_1 = arith.constant 0 : index
    %c0_2 = arith.constant 0 : index
    %1 = vector.load %arg2[%c0_1, %c0_2] : memref<512x128xbf16, #tpu.memory_space<vmem>>, vector<16x128xbf16>
    %c0_3 = arith.constant 0 : index
    %c0_4 = arith.constant 0 : index
    %2 = vector.load %arg3[%c0_3, %c0_4] : memref<8x128xf32, #tpu.memory_space<vmem>>, vector<1x128xf32>
    %cst = arith.constant dense<0.000000e+00> : vector<16x128xf32>
    %3 = tpu.matmul %0, %1, %cst {dimension_numbers = #tpu.dot_dimension_numbers<[1], [0], [0], [1], [0, 0, 1, 1], [], []>} : vector<16x16xbf16>, vector<16x128xbf16>, vector<16x128xf32> -> vector<16x128xf32>
    %4 = vector.broadcast %2 : vector<1x128xf32> to vector<16x128xf32>
    %5 = arith.addf %3, %4 : vector<16x128xf32>
    %cst_5 = arith.constant 0.000000e+00 : f32
    %6 = vector.broadcast %cst_5 : f32 to vector<16x128xf32>
    %7 = arith.maximumf %5, %6 : vector<16x128xf32>
    %8 = arith.truncf %7 : vector<16x128xf32> to vector<16x128xbf16>
    %c128 = arith.constant 128 : index
    %c0_6 = arith.constant 0 : index
    %9 = vector.load %arg2[%c128, %c0_6] : memref<512x128xbf16, #tpu.memory_space<vmem>>, vector<128x128xbf16>
    %c1 = arith.constant 1 : index
    %c0_7 = arith.constant 0 : index
    %10 = vector.load %arg3[%c1, %c0_7] : memref<8x128xf32, #tpu.memory_space<vmem>>, vector<1x128xf32>
    %cst_8 = arith.constant dense<0.000000e+00> : vector<16x128xf32>
    %11 = tpu.matmul %8, %9, %cst_8 {dimension_numbers = #tpu.dot_dimension_numbers<[1], [0], [0], [1], [0, 0, 1, 1], [], []>} : vector<16x128xbf16>, vector<128x128xbf16>, vector<16x128xf32> -> vector<16x128xf32>
    %12 = vector.broadcast %10 : vector<1x128xf32> to vector<16x128xf32>
    %13 = arith.addf %11, %12 : vector<16x128xf32>
    %cst_9 = arith.constant 0.000000e+00 : f32
    %14 = vector.broadcast %cst_9 : f32 to vector<16x128xf32>
    %15 = arith.maximumf %13, %14 : vector<16x128xf32>
    %16 = arith.truncf %15 : vector<16x128xf32> to vector<16x128xbf16>
    %c256 = arith.constant 256 : index
    %c0_10 = arith.constant 0 : index
    %17 = vector.load %arg2[%c256, %c0_10] : memref<512x128xbf16, #tpu.memory_space<vmem>>, vector<128x128xbf16>
    %c2 = arith.constant 2 : index
    %c0_11 = arith.constant 0 : index
    %18 = vector.load %arg3[%c2, %c0_11] : memref<8x128xf32, #tpu.memory_space<vmem>>, vector<1x128xf32>
    %cst_12 = arith.constant dense<0.000000e+00> : vector<16x128xf32>
    %19 = tpu.matmul %16, %17, %cst_12 {dimension_numbers = #tpu.dot_dimension_numbers<[1], [0], [0], [1], [0, 0, 1, 1], [], []>} : vector<16x128xbf16>, vector<128x128xbf16>, vector<16x128xf32> -> vector<16x128xf32>
    %20 = vector.broadcast %18 : vector<1x128xf32> to vector<16x128xf32>
    %21 = arith.addf %19, %20 : vector<16x128xf32>
    %cst_13 = arith.constant 0.000000e+00 : f32
    %22 = vector.broadcast %cst_13 : f32 to vector<16x128xf32>
    %23 = arith.maximumf %21, %22 : vector<16x128xf32>
    %24 = arith.truncf %23 : vector<16x128xf32> to vector<16x128xbf16>
    %c384 = arith.constant 384 : index
    %c0_14 = arith.constant 0 : index
    %25 = vector.load %arg2[%c384, %c0_14] : memref<512x128xbf16, #tpu.memory_space<vmem>>, vector<128x128xbf16>
    %c3 = arith.constant 3 : index
    %c0_15 = arith.constant 0 : index
    %26 = vector.load %arg3[%c3, %c0_15] : memref<8x128xf32, #tpu.memory_space<vmem>>, vector<1x128xf32>
    %cst_16 = arith.constant dense<0.000000e+00> : vector<16x128xf32>
    %27 = tpu.matmul %24, %25, %cst_16 {dimension_numbers = #tpu.dot_dimension_numbers<[1], [0], [0], [1], [0, 0, 1, 1], [], []>} : vector<16x128xbf16>, vector<128x128xbf16>, vector<16x128xf32> -> vector<16x128xf32>
    %28 = vector.broadcast %26 : vector<1x128xf32> to vector<16x128xf32>
    %29 = arith.addf %27, %28 : vector<16x128xf32>
    %30 = arith.truncf %29 : vector<16x128xf32> to vector<16x128xbf16>
    %c0_17 = arith.constant 0 : index
    %c0_18 = arith.constant 0 : index
    %31 = vector.load %arg4[%c0_17, %c0_18] : memref<16x128xbf16, #tpu.memory_space<vmem>>, vector<16x128xbf16>
    tpu.vector_store %arg4[%c0_17, %c0_18], %30 {strides = array<i32>} : memref<16x128xbf16, #tpu.memory_space<vmem>>, vector<16x128xbf16>,
    return
  }
  func.func @transform_0(%arg0: i32) -> (i32, i32) {
    %c0_i32 = arith.constant 0 : i32
    %c0_i32_0 = arith.constant 0 : i32
    return %arg0, %c0_i32 : i32, i32
  }
  func.func @transform_1(%arg0: i32) -> (i32, i32) {
    %c0_i32 = arith.constant 0 : i32
    %c0_i32_0 = arith.constant 0 : i32
    %c0_i32_1 = arith.constant 0 : i32
    return %c0_i32, %c0_i32_0 : i32, i32
  }
  func.func @transform_2(%arg0: i32) -> (i32, i32) {
    %c0_i32 = arith.constant 0 : i32
    %c0_i32_0 = arith.constant 0 : i32
    %c0_i32_1 = arith.constant 0 : i32
    return %c0_i32, %c0_i32_0 : i32, i32
  }
  func.func @transform_3(%arg0: i32) -> (i32, i32) {
    %c0_i32 = arith.constant 0 : i32
    %c0_i32_0 = arith.constant 0 : i32
    return %arg0, %c0_i32 : i32, i32
  }
}

</mosaic_0001>

<bundles_post_ra>
// kernel: _actor_forward.1
= control target key start
LH: loop header
LB: loop body
LE: loop exit
PB: predicated region body
PF: predicated region fallthrough
CT: control target
= control target key end

     0   :  { %8 = vsyncpa [#allocation3], 0  ;;  %s636_s12 = smov [#allocation2]   ;;  %s715_s0 = inlined_call_operand.vmem [shape: bf16[16,16], index: 0, kind: input, shape index: {}]   ;;  %s716_s1 = inlined_call_operand.hbm [shape: bf16[512,128], index: 1, kind: input, shape index: {}]   ;;  %s717_s2 = inlined_call_operand.vmem [shape: f32[8,128], index: 2, kind: input, shape index: {}]   ;;  %s718_s3 = inlined_call_operand.vmem [shape: bf16[16,128], index: 3, kind: output, shape index: {}]  }
   0x1   :  { %s16_s13 = sshll.u32 %s636_s12, 4  ;;  %s17_s13 = int_to_ptr.vmem [resolvable:$true] %s16_s13 }
   0x2   :  { %s622_s14 = scalar_lea.vmem %s17_s13, 4096  ;;  %p627_p1 = scmp.lt.s32.totalorder %s17_s13, %s17_s13 }
   0x3   :  { %p623_p0 = scmp.ne.s32.totalorder %s17_s13, %s622_s14  ;;  %p628_p2 = scmp.lt.s32.totalorder %s622_s14, %s622_s14 }
   0x5   :  { %p629_p3 = por %p628_p2, %p627_p1 }
   0x7   :  { %p630_p4 = pnand %p629_p3, %p623_p0 }
   0x9   :  { %633 = shalt.err (!%p630_p4)
}
   0xa   :  { %s637_s15 = smov 64   ;;  %s638_s16 = smov 4  }
   0xb   :  { %22 = dma.hbm_to_vmem [thread:$0]  %s716_s1, 4096, %s17_s13, [#allocation3], %s637_s15, %s637_s15, %s638_s16  }
   0xc   :  { %634 = dma.done.wait [#allocation3], 4096  }
   0xd   :  { %635 = vsyncadd [#allocation3], 4294963200  ;;  %v639_v0 = vmov 0.0   ;;  %vm640_vm0 = vmmov 0   ;;  %v588_v1 = vld [vmem:[#allocation2] sm:$0xff]   ;;  %vm49_vm1 = vcmask 130048  }
   0xe   :  { %517 = vmatprep.subr.bf16.mxu0 %v639_v0  ;;  %519 = vmatprep.mubr.msk.bf16.mxu0 %vm640_vm0, %v639_v0  ;;  %v589_v2 = vld [vmem:[%s715_s0] sm:$0xff]   ;;  %v590_v3 = vld [vmem:[#allocation2 + $0x78] sm:$0xff]   ;;  %v591_v4 = vld [vmem:[#allocation2 + $0x70] sm:$0xff]  }
   0xf   :  { %523 = vmatprep.subr.bf16.mxu1 %v639_v0  ;;  %539 = vmatprep.mubr.msk.bf16.mxu1 %vm640_vm0, %v639_v0  ;;  %v592_v5 = vld [vmem:[#allocation2 + $0x68] sm:$0xff]   ;;  %v593_v6 = vld [vmem:[#allocation2 + $0x60] sm:$0xff]   ;;  %v594_v7 = vld [vmem:[#allocation2 + $0x58] sm:$0xff]  }
  0x10   :  { %518 = vmatpush3.bf16.msra.mxu0 %v588_v1  ;;  %524 = vmatpush3.bf16.msra.mxu1 %v590_v3  ;;  %v595_v8 = vld [vmem:[#allocation2 + $0x50] sm:$0xff]   ;;  %v596_v9 = vld [vmem:[#allocation2 + $0x48] sm:$0xff]   ;;  %v597_v10 = vld [vmem:[#allocation2 + $0x40] sm:$0xff]  }
  0x11   :  { %543 = vmatprep.subr.bf16.mxu0 %v639_v0  ;;  %525 = vmatprep.subr.bf16.mxu1 %v639_v0  ;;  %v598_v11 = vld [vmem:[#allocation2 + $0xb8] sm:$0xff]   ;;  %v599_v12 = vld [vmem:[#allocation2 + $0xb0] sm:$0xff]   ;;  %v600_v13 = vld [vmem:[#allocation2 + $0xa8] sm:$0xff]  }
  0x12   :  { %v601_v14 = vld [vmem:[#allocation2 + $0xa0] sm:$0xff]   ;;  %v602_v15 = vld [vmem:[#allocation2 + $0x98] sm:$0xff]   ;;  %v603_v26 = vld [vmem:[#allocation2 + $0x90] sm:$0xff]  }
  0x13   :  { %520 = vmatmul.mubr.msk.bf16.vlgmr.msra.gmra.mxu0 %vm49_vm1, %v589_v2  ;;  %v448_v16 = vld [vmem:[%s717_s2] ss:$0 sm:$0xff]  ;;  %v604_v27 = vld [vmem:[#allocation2 + $0x88] sm:$0xff]   ;;  %v606_v29 = vld [vmem:[#allocation2 + $0xf8] sm:$0xff]  }
  0x14   :  { %559 = vmatprep.mubr.msk.bf16.mxu0 %vm640_vm0, %v639_v0  ;;  %526 = vmatpush3.bf16.msra.mxu1 %v591_v4  ;;  %v605_v28 = vld [vmem:[#allocation2 + $0x80] sm:$0xff]   ;;  %v607_v30 = vld [vmem:[#allocation2 + $0xf0] sm:$0xff]   ;;  %v608_v31 = vld [vmem:[#allocation2 + $0xe8] sm:$0xff]  }
  0x15   :  { %527 = vmatprep.subr.bf16.mxu1 %v639_v0  ;;  %544 = vmatpush3.bf16.msra.mxu0 %v598_v11  ;;  %v609_v32 = vld [vmem:[#allocation2 + $0xe0] sm:$0xff]   ;;  %v610_v33 = vld [vmem:[#allocation2 + $0xd8] sm:$0xff]   ;;  %v611_v44 = vld [vmem:[#allocation2 + $0xd0] sm:$0xff]  }
  0x16   :  { %545 = vmatprep.subr.bf16.mxu0 %v639_v0  ;;  %v452_v34 = vld [vmem:[%s717_s2 + $0x1] ss:$0 sm:$0xff]  ;;  %v612_v45 = vld [vmem:[#allocation2 + $0xc8] sm:$0xff]   ;;  %v461_v47 = vld [vmem:[%s717_s2 + $0x2] ss:$0 sm:$0xff] }
  0x17   :  { %v613_v46 = vld [vmem:[#allocation2 + $0xc0] sm:$0xff]  }
  0x18   :  { %528 = vmatpush3.bf16.msra.mxu1 %v592_v5  ;;  %v470_v58 = vld [vmem:[%s717_s2 + $0x3] ss:$0 sm:$0xff] }
  0x19   :  { %529 = vmatprep.subr.bf16.mxu1 %v639_v0  ;;  %546 = vmatpush3.bf16.msra.mxu0 %v599_v12 }
  0x1a   :  { %547 = vmatprep.subr.bf16.mxu0 %v639_v0 }
  0x1c   :  { %530 = vmatpush3.bf16.msra.mxu1 %v593_v6 }
  0x1d   :  { %531 = vmatprep.subr.bf16.mxu1 %v639_v0  ;;  %548 = vmatpush3.bf16.msra.mxu0 %v600_v13 }
  0x1e   :  { %549 = vmatprep.subr.bf16.mxu0 %v639_v0 }
  0x20   :  { %532 = vmatpush3.bf16.msra.mxu1 %v594_v7 }
  0x21   :  { %533 = vmatprep.subr.bf16.mxu1 %v639_v0  ;;  %550 = vmatpush3.bf16.msra.mxu0 %v601_v14 }
  0x22   :  { %551 = vmatprep.subr.bf16.mxu0 %v639_v0 }
  0x24   :  { %534 = vmatpush3.bf16.msra.mxu1 %v595_v8 }
  0x25   :  { %535 = vmatprep.subr.bf16.mxu1 %v639_v0  ;;  %552 = vmatpush3.bf16.msra.mxu0 %v602_v15 }
  0x26   :  { %553 = vmatprep.subr.bf16.mxu0 %v639_v0 }
  0x28   :  { %536 = vmatpush3.bf16.msra.mxu1 %v596_v9 }
  0x29   :  { %537 = vmatprep.subr.bf16.mxu1 %v639_v0  ;;  %554 = vmatpush3.bf16.msra.mxu0 %v603_v26 }
  0x2a   :  { %555 = vmatprep.subr.bf16.mxu0 %v639_v0 }
  0x2c   :  { %538 = vmatpush3.bf16.msra.mxu1 %v597_v10 }
  0x2d   :  { %563 = vmatprep.subr.bf16.mxu1 %v639_v0  ;;  %556 = vmatpush3.bf16.msra.mxu0 %v604_v27 }
  0x2e   :  { %557 = vmatprep.subr.bf16.mxu0 %v639_v0 }
  0x31   :  { %558 = vmatpush3.bf16.msra.mxu0 %v605_v28 }
  0xd3   :  { %v87_v17 = vpop.f32.mrf.mxu0 }
  0xd4   :  { %v88_v19 = vadd.f32 %v448_v16, %v87_v17 }
  0xd5   :  { %v521_v18 = vpop.f32.mrf.mxu0 }
  0xd6   :  { %v94_v23 = vmax.f32 %v88_v19, 0.0 }
  0xd7   :  { %v90_v20 = vpop.f32.mrf.mxu0 }
  0xd8   :  { %v91_v21 = vadd.f32 %v448_v16, %v90_v20 }
  0xd9   :  { %v522_v22 = vpop.f32.mrf.mxu0 }
  0xda   :  { %v95_v24 = vmax.f32 %v91_v21, 0.0 }
  0xdc   :  { %v96_v25 = vpack.c.bf16 %v95_v24, %v94_v23 }
  0xde   :  { %540 = vmatmul.mubr.bf16.vlgmr.msra.gmra.mxu1 %v96_v25 }
  0xdf   :  { %579 = vmatprep.mubr.msk.bf16.mxu1 %vm640_vm0, %v639_v0  ;;  %564 = vmatpush3.bf16.msra.mxu1 %v606_v29 }
  0xe0   :  { %565 = vmatprep.subr.bf16.mxu1 %v639_v0 }
  0xe3   :  { %566 = vmatpush3.bf16.msra.mxu1 %v607_v30 }
  0xe4   :  { %567 = vmatprep.subr.bf16.mxu1 %v639_v0 }
  0xe7   :  { %568 = vmatpush3.bf16.msra.mxu1 %v608_v31 }
  0xe8   :  { %569 = vmatprep.subr.bf16.mxu1 %v639_v0 }
  0xeb   :  { %570 = vmatpush3.bf16.msra.mxu1 %v609_v32 }
  0xec   :  { %571 = vmatprep.subr.bf16.mxu1 %v639_v0 }
  0xef   :  { %572 = vmatpush3.bf16.msra.mxu1 %v610_v33 }
  0xf0   :  { %573 = vmatprep.subr.bf16.mxu1 %v639_v0 }
  0xf3   :  { %574 = vmatpush3.bf16.msra.mxu1 %v611_v44 }
  0xf4   :  { %575 = vmatprep.subr.bf16.mxu1 %v639_v0 }
  0xf7   :  { %576 = vmatpush3.bf16.msra.mxu1 %v612_v45 }
  0xf8   :  { %577 = vmatprep.subr.bf16.mxu1 %v639_v0 }
  0xfb   :  { %578 = vmatpush3.bf16.msra.mxu1 %v613_v46 }
 0x19e   :  { %v200_v35 = vpop.f32.mrf.mxu1 }
 0x19f   :  { %v201_v37 = vadd.f32 %v452_v34, %v200_v35 }
 0x1a0   :  { %v541_v36 = vpop.f32.mrf.mxu1 }
 0x1a1   :  { %v207_v41 = vmax.f32 %v201_v37, 0.0 }
 0x1a2   :  { %v203_v38 = vpop.f32.mrf.mxu1 }
 0x1a3   :  { %v204_v39 = vadd.f32 %v452_v34, %v203_v38 }
 0x1a4   :  { %v542_v40 = vpop.f32.mrf.mxu1 }
 0x1a5   :  { %v208_v42 = vmax.f32 %v204_v39, 0.0 }
 0x1a7   :  { %v209_v43 = vpack.c.bf16 %v208_v42, %v207_v41 }
 0x1a9   :  { %560 = vmatmul.mubr.bf16.vlgmr.msra.gmra.mxu0 %v209_v43 }
 0x269   :  { %v313_v48 = vpop.f32.mrf.mxu0 }
 0x26a   :  { %v314_v50 = vadd.f32 %v461_v47, %v313_v48 }
 0x26b   :  { %v561_v49 = vpop.f32.mrf.mxu0 }
 0x26c   :  { %v320_v54 = vmax.f32 %v314_v50, 0.0 }
 0x26d   :  { %v316_v51 = vpop.f32.mrf.mxu0 }
 0x26e   :  { %v317_v52 = vadd.f32 %v461_v47, %v316_v51 }
 0x26f   :  { %v562_v53 = vpop.f32.mrf.mxu0 }
 0x270   :  { %v321_v55 = vmax.f32 %v317_v52, 0.0 }
 0x272   :  { %v322_v56 = vpack.c.bf16 %v321_v55, %v320_v54 }
 0x274   :  { %580 = vmatmul.mubr.bf16.vlgmr.msra.gmra.mxu1 %v322_v56 }
 0x334   :  { %v426_v57 = vpop.f32.mrf.mxu1 }
 0x335   :  { %v427_v61 = vadd.f32 %v470_v58, %v426_v57 }
 0x336   :  { %v581_v59 = vpop.f32.mrf.mxu1 }
 0x338   :  { %v429_v60 = vpop.f32.mrf.mxu1 }
 0x339   :  { %v430_v62 = vadd.f32 %v470_v58, %v429_v60 }
 0x33a   :  { %v582_v63 = vpop.f32.mrf.mxu1 }
 0x33b   :  { %v486_v0 = vpack.c.bf16 %v430_v62, %v427_v61 }
 0x33d   :  { %487 = vst [vmem:[%s718_s3] sm:$0xff] %v486_v0  }
 0x33e   :  { %447 = vsyncpa [#allocation3], 1 }

</bundles_post_ra>
